<compile_context>
chip_gen: v6e
topology: v6e:2x2x1
jax: 0.10.0
libtpu: 0.0.40
codegen_flags: <defaults>
</compile_context>

<pallas_src>
import functools

import jax
import jax.numpy as jnp
from jax.experimental import pallas as pl
from jax.experimental.pallas import tpu as pltpu

HID_SIZE = 128


def actor_mu_kernel(x_ref, w1_ref, b1_ref, w2_ref, b2_ref, mu_ref):
    # In-kernel activation cast: no-op for f32 weights; gives a single-pass
    # bf16 MXU matmul when the resident weights are bf16.  f32 accumulation.
    x = x_ref[...].astype(w1_ref.dtype)
    h = jnp.tanh(
        jnp.dot(x, w1_ref[...], preferred_element_type=jnp.float32) + b1_ref[...]
    )
    h = h.astype(w2_ref.dtype)
    mu = jnp.tanh(
        jnp.dot(h, w2_ref[...], preferred_element_type=jnp.float32) + b2_ref[...]
    )
    mu_ref[...] = mu.astype(mu_ref.dtype)


@functools.partial(jax.jit, static_argnames=("block_b", "use_bf16"))
def actor_forward(x, w1, b1, w2, b2, logstd, *, block_b=2048, use_bf16=False):
    """Returns (mu, std). std has shape (act_size,); it broadcasts against mu
    exactly like torch's Normal(mu, logstd.exp())."""
    B, obs_size = x.shape
    act_size = w2.shape[1]

    # Batch tile: multiple of 8 (sublane), at most block_b, and capped near
    # half the batch so large B always gives >= 2 grid steps (v7x megacore).
    half_b = pl.cdiv(pl.cdiv(B, 2), 8) * 8
    tile_b = max(8, min(block_b, half_b))
    grid = (pl.cdiv(B, tile_b),)

    # Resident weights: cast once in the wrapper (~20 KiB).  Activations stay
    # f32 in HBM and are cast inside the kernel when use_bf16=True.
    w_dtype = jnp.bfloat16 if use_bf16 else jnp.float32
    w1_in = w1.astype(w_dtype)
    w2_in = w2.astype(w_dtype)
    # Biases kept 2D (1, N) in f32 so they map onto (sublane, lane) and the
    # bias-add / tanh run in f32 regardless of the MXU stream dtype.
    b1_2d = b1.reshape(1, HID_SIZE).astype(jnp.float32)
    b2_2d = b2.reshape(1, act_size).astype(jnp.float32)

    # Cost hint so XLA schedules this small fused call against neighbors.
    cost = pl.CostEstimate(
        flops=2 * B * (obs_size * HID_SIZE + HID_SIZE * act_size),
        transcendentals=B * (HID_SIZE + act_size),
        bytes_accessed=(
            B * (obs_size + act_size) * 4
            + (obs_size * HID_SIZE + HID_SIZE * act_size) * (2 if use_bf16 else 4)
        ),
    )

    # Scoped-VMEM estimate (lane-padded buffers, double-buffered stream);
    # only override the default when it nears v5e's 16 MiB default limit.
    lane = 128
    p_obs = pl.cdiv(obs_size, lane) * lane
    p_hid = pl.cdiv(HID_SIZE, lane) * lane
    p_act = pl.cdiv(act_size, lane) * lane
    w_bytes = 2 if use_bf16 else 4
    est_vmem = (
        2 * tile_b * p_obs * 4                                  # x blocks (f32)
        + 2 * tile_b * p_act * 4                                # mu blocks (lane-padded)
        + 2 * (p_obs * HID_SIZE + HID_SIZE * p_act) * w_bytes   # resident weights
        + 4 * (p_hid + p_act) * 4                               # biases
        + 2 * tile_b * p_hid * 4                                # hidden activation headroom
    )
    compiler_kwargs = {"dimension_semantics": ("parallel",)}
    if est_vmem > 12 * 1024 * 1024:
        compiler_kwargs["vmem_limit_bytes"] = min(2 * est_vmem, 64 * 1024 * 1024)

    mu = pl.pallas_call(
        actor_mu_kernel,
        out_shape=jax.ShapeDtypeStruct((B, act_size), jnp.float32),
        grid=grid,
        in_specs=[
            # activation stream: tiled over batch (double-buffered by Pallas);
            # ragged last block reads unused garbage, output writes are masked.
            pl.BlockSpec((tile_b, obs_size), lambda i: (i, 0)),
            # weights / biases: resident across all grid steps
            pl.BlockSpec((obs_size, HID_SIZE), lambda i: (0, 0)),
            pl.BlockSpec((1, HID_SIZE), lambda i: (0, 0)),
            pl.BlockSpec((HID_SIZE, act_size), lambda i: (0, 0)),
            pl.BlockSpec((1, act_size), lambda i: (0, 0)),
        ],
        out_specs=pl.BlockSpec((tile_b, act_size), lambda i: (i, 0)),
        compiler_params=pltpu.CompilerParams(**compiler_kwargs),
        cost_estimate=cost,
    )(x.astype(jnp.float32), w1_in, b1_2d, w2_in, b2_2d)

    # std = exp(logstd): batch independent -> returned as (act_size,), never
    # materialized as a (B, act) broadcast.
    std = jnp.exp(logstd.astype(jnp.float32))
    return mu, std


def init_actor_params(key, obs_size, act_size):
    """Deterministic init mirroring nn.Linear defaults (uniform +/- 1/sqrt(fan_in))."""
    k1, k2, k3, k4 = jax.random.split(key, 4)
    lim1 = 1.0 / jnp.sqrt(jnp.float32(obs_size))
    lim2 = 1.0 / jnp.sqrt(jnp.float32(HID_SIZE))
    w1 = jax.random.uniform(k1, (obs_size, HID_SIZE), jnp.float32, -lim1, lim1)
    b1 = jax.random.uniform(k2, (HID_SIZE,), jnp.float32, -lim1, lim1)
    w2 = jax.random.uniform(k3, (HID_SIZE, act_size), jnp.float32, -lim2, lim2)
    b2 = jax.random.uniform(k4, (act_size,), jnp.float32, -lim2, lim2)
    logstd = jnp.zeros((act_size,), jnp.float32)  # nn.Parameter(torch.zeros(act_size))
    return w1, b1, w2, b2, logstd


def _reference(x, w1, b1, w2, b2, logstd):
    h = jnp.tanh(x @ w1 + b1)
    mu = jnp.tanh(h @ w2 + b2)
    std = jnp.broadcast_to(jnp.exp(logstd), mu.shape)
    return mu, std


if __name__ == "__main__":
    OBS_SIZE, ACT_SIZE = 32, 8

    key = jax.random.PRNGKey(0)
    kx, kp = jax.random.split(key)
    w1, b1, w2, b2, logstd = init_actor_params(kp, OBS_SIZE, ACT_SIZE)

    # ---- primary check: small batch, f32, single grid step ----
    B = 8
    x = jax.random.normal(kx, (B, OBS_SIZE), jnp.float32)
    mu, std = actor_forward(x, w1, b1, w2, b2, logstd)
    jax.block_until_ready((mu, std))
    mu_ref, std_ref = _reference(x, w1, b1, w2, b2, logstd)
    assert mu.shape == (B, ACT_SIZE) and std.shape == (ACT_SIZE,)
    assert jnp.allclose(mu, mu_ref, atol=1e-5), "mu mismatch (f32)"
    assert jnp.allclose(jnp.broadcast_to(std, mu.shape), std_ref, atol=1e-6), "std mismatch"

    # ---- ragged batch, no wrapper pad/slice, multi-step parallel grid ----
    B2 = 40  # with block_b=16 -> blocks of 16,16,8 (last block masked)
    x2 = jax.random.normal(jax.random.fold_in(kx, 1), (B2, OBS_SIZE), jnp.float32)
    mu2, std2 = actor_forward(x2, w1, b1, w2, b2, logstd, block_b=16)
    jax.block_until_ready((mu2, std2))
    mu2_ref, std2_ref = _reference(x2, w1, b1, w2, b2, logstd)
    assert mu2.shape == (B2, ACT_SIZE)
    assert jnp.allclose(mu2, mu2_ref, atol=1e-5), "mu mismatch (ragged f32)"
    assert jnp.allclose(jnp.broadcast_to(std2, mu2.shape), std2_ref, atol=1e-6), "std mismatch"

    # ---- bf16 in-kernel activation/weight cast (f32 accumulation), loose tol ----
    mu3, std3 = actor_forward(x2, w1, b1, w2, b2, logstd, block_b=16, use_bf16=True)
    jax.block_until_ready((mu3, std3))
    assert jnp.allclose(mu3, mu2_ref, atol=2e-2), "mu mismatch (bf16)"
    assert jnp.allclose(jnp.broadcast_to(std3, mu3.shape), std2_ref, atol=1e-6), "std mismatch"

    print("KERNEL_OK")
</pallas_src>

<mosaic_0001>
module attributes {stable_mosaic.version = 11 : i64} {
  func.func @actor_mu_kernel(%arg0: i32, %arg1: memref<8x32xf32, #tpu.memory_space<vmem>>, %arg2: memref<32x128xf32, #tpu.memory_space<vmem>>, %arg3: memref<1x128xf32, #tpu.memory_space<vmem>>, %arg4: memref<128x8xf32, #tpu.memory_space<vmem>>, %arg5: memref<1x8xf32, #tpu.memory_space<vmem>>, %arg6: memref<8x8xf32, #tpu.memory_space<vmem>>) attributes {dimension_semantics = [#tpu.dimension_semantics<parallel>], iteration_bounds = array<i64: 1>, scalar_prefetch = 0 : i64, scratch_operands = 0 : i64, tpu.core_type = #tpu.core_type<tc>, window_params = [{transform_indices = @transform_0, window_bounds = array<i64: 8, 32>}, {pipeline_mode = #tpu.pipeline_mode<synchronous>, transform_indices = @transform_1, window_bounds = array<i64: 32, 128>}, {pipeline_mode = #tpu.pipeline_mode<synchronous>, transform_indices = @transform_2, window_bounds = array<i64: 1, 128>}, {pipeline_mode = #tpu.pipeline_mode<synchronous>, transform_indices = @transform_3, window_bounds = array<i64: 128, 8>}, {pipeline_mode = #tpu.pipeline_mode<synchronous>, transform_indices = @transform_4, window_bounds = array<i64: 1, 8>}, {transform_indices = @transform_5, window_bounds = array<i64: 8, 8>}]} {
    %c0 = arith.constant 0 : index
    %c0_0 = arith.constant 0 : index
    %0 = vector.load %arg1[%c0, %c0_0] : memref<8x32xf32, #tpu.memory_space<vmem>>, vector<8x32xf32>
    %c0_1 = arith.constant 0 : index
    %c0_2 = arith.constant 0 : index
    %1 = vector.load %arg2[%c0_1, %c0_2] : memref<32x128xf32, #tpu.memory_space<vmem>>, vector<32x128xf32>
    %cst = arith.constant dense<0.000000e+00> : vector<8x128xf32>
    %2 = tpu.matmul %0, %1, %cst {dimension_numbers = #tpu.dot_dimension_numbers<[1], [0], [0], [1], [0, 0, 1, 1], [], []>} : vector<8x32xf32>, vector<32x128xf32>, vector<8x128xf32> -> vector<8x128xf32>
    %c0_3 = arith.constant 0 : index
    %c0_4 = arith.constant 0 : index
    %3 = vector.load %arg3[%c0_3, %c0_4] : memref<1x128xf32, #tpu.memory_space<vmem>>, vector<1x128xf32>
    %4 = vector.broadcast %3 : vector<1x128xf32> to vector<8x128xf32>
    %5 = arith.addf %2, %4 : vector<8x128xf32>
    %6 = math.tanh %5 : vector<8x128xf32>
    %c0_5 = arith.constant 0 : index
    %c0_6 = arith.constant 0 : index
    %7 = vector.load %arg4[%c0_5, %c0_6] : memref<128x8xf32, #tpu.memory_space<vmem>>, vector<128x8xf32>
    %cst_7 = arith.constant dense<0.000000e+00> : vector<8x8xf32>
    %8 = tpu.matmul %6, %7, %cst_7 {dimension_numbers = #tpu.dot_dimension_numbers<[1], [0], [0], [1], [0, 0, 1, 1], [], []>} : vector<8x128xf32>, vector<128x8xf32>, vector<8x8xf32> -> vector<8x8xf32>
    %c0_8 = arith.constant 0 : index
    %c0_9 = arith.constant 0 : index
    %9 = vector.load %arg5[%c0_8, %c0_9] : memref<1x8xf32, #tpu.memory_space<vmem>>, vector<1x8xf32>
    %10 = vector.broadcast %9 : vector<1x8xf32> to vector<8x8xf32>
    %11 = arith.addf %8, %10 : vector<8x8xf32>
    %12 = math.tanh %11 : vector<8x8xf32>
    %c0_10 = arith.constant 0 : index
    %c0_11 = arith.constant 0 : index
    %13 = vector.load %arg6[%c0_10, %c0_11] : memref<8x8xf32, #tpu.memory_space<vmem>>, vector<8x8xf32>
    tpu.vector_store %arg6[%c0_10, %c0_11], %12 {strides = array<i32>} : memref<8x8xf32, #tpu.memory_space<vmem>>, vector<8x8xf32>,
    return
  }
  func.func @transform_0(%arg0: i32) -> (i32, i32) {
    %c0_i32 = arith.constant 0 : i32
    %c0_i32_0 = arith.constant 0 : i32
    return %arg0, %c0_i32 : i32, i32
  }
  func.func @transform_1(%arg0: i32) -> (i32, i32) {
    %c0_i32 = arith.constant 0 : i32
    %c0_i32_0 = arith.constant 0 : i32
    %c0_i32_1 = arith.constant 0 : i32
    return %c0_i32, %c0_i32_0 : i32, i32
  }
  func.func @transform_2(%arg0: i32) -> (i32, i32) {
    %c0_i32 = arith.constant 0 : i32
    %c0_i32_0 = arith.constant 0 : i32
    %c0_i32_1 = arith.constant 0 : i32
    return %c0_i32, %c0_i32_0 : i32, i32
  }
  func.func @transform_3(%arg0: i32) -> (i32, i32) {
    %c0_i32 = arith.constant 0 : i32
    %c0_i32_0 = arith.constant 0 : i32
    %c0_i32_1 = arith.constant 0 : i32
    return %c0_i32, %c0_i32_0 : i32, i32
  }
  func.func @transform_4(%arg0: i32) -> (i32, i32) {
    %c0_i32 = arith.constant 0 : i32
    %c0_i32_0 = arith.constant 0 : i32
    %c0_i32_1 = arith.constant 0 : i32
    return %c0_i32, %c0_i32_0 : i32, i32
  }
  func.func @transform_5(%arg0: i32) -> (i32, i32) {
    %c0_i32 = arith.constant 0 : i32
    %c0_i32_0 = arith.constant 0 : i32
    return %arg0, %c0_i32 : i32, i32
  }
}

</mosaic_0001>

<bundles_post_ra>
// kernel: actor_forward.1
= control target key start
LH: loop header
LB: loop body
LE: loop exit
PB: predicated region body
PF: predicated region fallthrough
CT: control target
= control target key end

     0   :  { %v318_v1 = vmov 0.0   ;;  %vm319_vm0 = vmmov 0   ;;  %s447_s0 = inlined_call_operand.vmem [shape: f32[8,32], index: 0, kind: input, shape index: {}]   ;;  %s448_s1 = inlined_call_operand.vmem [shape: f32[32,128], index: 1, kind: input, shape index: {}]   ;;  %s449_s2 = inlined_call_operand.vmem [shape: f32[1,128], index: 2, kind: input, shape index: {}]   ;;  %s450_s3 = inlined_call_operand.vmem [shape: f32[128,8], index: 3, kind: input, shape index: {}]   ;;  %s451_s4 = inlined_call_operand.vmem [shape: f32[1,8], index: 4, kind: input, shape index: {}]   ;;  %s452_s5 = inlined_call_operand.hbm [shape: f32[8,8], index: 5, kind: output, shape index: {}]  }
   0x1   :  { %v25_v0 = vld [vmem:[%s448_s1 + $0x18] sm:$0xff]  ;;  %243 = vmatprep.subr.mxu0 %v318_v1  ;;  %v24_v2 = vld [vmem:[%s448_s1 + $0x10] sm:$0xff]  ;;  %251 = vmatprep.mubr.msk.f32.mxu0 %vm319_vm0, %v318_v1  ;;  %v23_v5 = vld [vmem:[%s448_s1 + $0x8] sm:$0xff] }
   0x2   :  { %v123_v3 = vld [vmem:[%s450_s3 + $0x78] sm:$0xff]  ;;  %244 = vmatpush3.msra.mxu0 %v25_v0  ;;  %254 = vmatprep.subr.mxu1 %v318_v1  ;;  %v122_v4 = vld [vmem:[%s450_s3 + $0x70] sm:$0xff]  ;;  %v121_v6 = vld [vmem:[%s450_s3 + $0x68] sm:$0xff] }
   0x3   :  { %245 = vmatprep.subr.mxu0 %v318_v1  ;;  %255 = vmatpush3.msra.mxu1 %v123_v3 }
   0x4   :  { %246 = vmatpush3.msra.mxu0 %v24_v2  ;;  %256 = vmatprep.subr.mxu1 %v318_v1 }
   0x5   :  { %10 = vsyncpa [#allocation3], 0  ;;  %247 = vmatprep.subr.mxu0 %v318_v1  ;;  %v22_v7 = vld [vmem:[%s448_s1] sm:$0xff]  ;;  %257 = vmatpush3.msra.mxu1 %v122_v4  ;;  %vm33_vm1 = vcmask 261120   ;;  %v119_v10 = vld [vmem:[%s450_s3 + $0x58] sm:$0xff]  ;;  %vm202_vm2 = vcmask 64512  }
   0x6   :  { %248 = vmatpush3.msra.mxu0 %v23_v5  ;;  %v21_v8 = vld [vmem:[%s447_s0] sm:$0xff]  ;;  %258 = vmatprep.subr.mxu1 %v318_v1  ;;  %v118_v11 = vld [vmem:[%s450_s3 + $0x50] sm:$0xff]  ;;  %v117_v12 = vld [vmem:[%s450_s3 + $0x48] sm:$0xff] }
   0x7   :  { %v120_v9 = vld [vmem:[%s450_s3 + $0x60] sm:$0xff]  ;;  %249 = vmatprep.subr.mxu0 %v318_v1  ;;  %259 = vmatpush3.msra.mxu1 %v121_v6  ;;  %v115_v14 = vld [vmem:[%s450_s3 + $0x38] sm:$0xff]  ;;  %v114_v15 = vld [vmem:[%s450_s3 + $0x30] sm:$0xff] }
   0x8   :  { %250 = vmatpush3.msra.mxu0 %v22_v7  ;;  %260 = vmatprep.subr.mxu1 %v318_v1  ;;  %v116_v13 = vld [vmem:[%s450_s3 + $0x40] sm:$0xff]  ;;  %v113_v16 = vld [vmem:[%s450_s3 + $0x28] sm:$0xff]  ;;  %v111_v18 = vld [vmem:[%s450_s3 + $0x18] sm:$0xff] }
   0x9   :  { %252 = vmatmul.mubr.msk.f32.vlgmr.msra.gmra.mxu0 %vm33_vm1, %v21_v8  ;;  %261 = vmatpush3.msra.mxu1 %v120_v9  ;;  %v112_v17 = vld [vmem:[%s450_s3 + $0x20] sm:$0xff]  ;;  %v110_v19 = vld [vmem:[%s450_s3 + $0x10] sm:$0xff]  ;;  %v109_v20 = vld [vmem:[%s450_s3 + $0x8] sm:$0xff] }
   0xa   :  { %262 = vmatprep.subr.mxu1 %v318_v1  ;;  %286 = vmatprep.mubr.msk.f32.mxu1 %vm319_vm0, %v318_v1  ;;  %v108_v21 = vld [vmem:[%s450_s3] sm:$0xff]  ;;  %s320_s3 = smov [#allocation2]  }
   0xb   :  { %263 = vmatpush3.msra.mxu1 %v119_v10  ;;  %v218_v22 = vld [vmem:[%s449_s2] ss:$0 sm:$0xff]  ;;  %s210_s11 = sshll.u32 %s320_s3, 4  ;;  %s211_s11 = int_to_ptr.vmem [resolvable:$true] %s210_s11 }
   0xc   :  { %264 = vmatprep.subr.mxu1 %v318_v1  ;;  %v220_v27 = vld [vmem:[%s451_s4] ss:$0 sm:$0xff]  ;;  %s296_s2 = scalar_lea.vmem %s211_s11, 128  ;;  %p301_p1 = scmp.lt.s32.totalorder %s211_s11, %s211_s11 }
   0xd   :  { %265 = vmatpush3.msra.mxu1 %v118_v11  ;;  %p297_p0 = scmp.ne.s32.totalorder %s211_s11, %s296_s2  ;;  %p302_p2 = scmp.lt.s32.totalorder %s296_s2, %s296_s2 }
   0xe   :  { %266 = vmatprep.subr.mxu1 %v318_v1 }
   0xf   :  { %267 = vmatpush3.msra.mxu1 %v117_v12  ;;  %p303_p3 = por %p302_p2, %p301_p1 }
  0x10   :  { %268 = vmatprep.subr.mxu1 %v318_v1 }
  0x11   :  { %269 = vmatpush3.msra.mxu1 %v116_v13  ;;  %p304_p4 = pnand %p303_p3, %p297_p0 }
  0x12   :  { %270 = vmatprep.subr.mxu1 %v318_v1 }
  0x13   :  { %271 = vmatpush3.msra.mxu1 %v115_v14 }
  0x14   :  { %272 = vmatprep.subr.mxu1 %v318_v1 }
  0x15   :  { %273 = vmatpush3.msra.mxu1 %v114_v15 }
  0x16   :  { %274 = vmatprep.subr.mxu1 %v318_v1 }
  0x17   :  { %275 = vmatpush3.msra.mxu1 %v113_v16 }
  0x18   :  { %276 = vmatprep.subr.mxu1 %v318_v1 }
  0x19   :  { %277 = vmatpush3.msra.mxu1 %v112_v17 }
  0x1a   :  { %278 = vmatprep.subr.mxu1 %v318_v1 }
  0x1b   :  { %279 = vmatpush3.msra.mxu1 %v111_v18 }
  0x1c   :  { %280 = vmatprep.subr.mxu1 %v318_v1 }
  0x1d   :  { %281 = vmatpush3.msra.mxu1 %v110_v19 }
  0x1e   :  { %282 = vmatprep.subr.mxu1 %v318_v1 }
  0x1f   :  { %283 = vmatpush3.msra.mxu1 %v109_v20 }
  0x20   :  { %284 = vmatprep.subr.mxu1 %v318_v1 }
  0x21   :  { %285 = vmatpush3.msra.mxu1 %v108_v21 }
  0xc9   :  { %v103_v23 = vpop.f32.mrf.mxu0 }
  0xca   :  { %v104_v24 = vadd.f32 %v218_v22, %v103_v23 }
  0xcb   :  { %v253_v25 = vpop.f32.mrf.mxu0 }
  0xcc   :  { %292 = vtanh.f32 %v104_v24 }
  0xd9   :  { %v293_v26 = vpop.eup %292 }
  0xda   :  { %287 = vmatmul.mubr.f32.vlgmr.msra.gmra.mxu1 %v293_v26 }
 0x19a   :  { %v197_v28 = vpop.f32.mrf.mxu1 }
 0x19b   :  { %v198_v29 = vadd.f32 %v220_v27, %v197_v28 }
 0x19c   :  { %v288_v30 = vpop.f32.mrf.mxu1 }
 0x19d   :  { %294 = vtanh.f32 %v198_v29 }
 0x1aa   :  { %v295_v31 = vpop.eup %294 }
 0x1ab   :  { %203 = vst.msk [vmem:[#allocation2] sm:$0xff] %vm202_vm2, %v295_v31 }
 0x1ac   :  { %307 = shalt.err (!%p304_p4)
}
 0x1ad   :  { %213 = dma.vmem_to_hbm [thread:$0]  %s211_s11, 128, %s452_s5, [#allocation3]  }
 0x1ae   :  { %316 = dma.done.wait [#allocation3], 128  }
 0x1af   :  { %317 = vsyncadd [#allocation3], 4294967168 }
 0x1b0   :  { %217 = vsyncpa [#allocation3], 1 }

</bundles_post_ra>
